<compile_context>
chip_gen: v7x
topology: tpu7x:2x2x1
jax: 0.10.0
libtpu: 0.0.40
codegen_flags: <defaults>
</compile_context>

<pallas_src>
import functools

import jax
import jax.numpy as jnp
import numpy as np
from jax.experimental import pallas as pl
from jax.experimental.pallas import tpu as pltpu

_LANES = 128
_SUBLANES = 8


# ---------------------------------------------------------------------------
# Kernels
# ---------------------------------------------------------------------------
def _planar_flow_packed_kernel(scal_ref, x_ref, sw_ref, su_ref, out_ref, ld_ref,
                               *, k):
    """Lane-packed path: each VMEM row carries k = 128 // d original rows.

    scal_ref : SMEM f32[2]      -> [b, w @ u_hat.T]
    x_ref    : VMEM (tm, 128)   packed x rows
    sw_ref   : VMEM (128, 128)  block-diagonal selector with w folded in
    su_ref   : VMEM (128, 128)  broadcast-back selector with u_hat folded in
    out_ref  : VMEM (tm, 128)
    ld_ref   : VMEM (tm, k)
    """
    b = scal_ref[0]
    wtu = scal_ref[1]

    xf = x_ref[...].astype(jnp.float32)                              # (tm, 128)

    # Segmented reduction over each d-lane segment via the MXU:
    # lin_full[:, c] = x_row_c . w  for c < k, and just b for c >= k (unused).
    lin_full = jnp.dot(xf, sw_ref[...],
                       preferred_element_type=jnp.float32) + b       # (tm, 128)
    h_full = jnp.tanh(lin_full)                                      # (tm, 128)

    # Broadcast h back over each d-lane segment (rows >= k of su are zero, so
    # the unused tanh columns contribute nothing): out = x + h(lin) * u_hat.
    out_ref[...] = (xf + jnp.dot(h_full, su_ref[...],
                                 preferred_element_type=jnp.float32)
                    ).astype(out_ref.dtype)

    # log|det J| = log|1 + h'(lin) * (w . u_hat)|, one value per original row.
    h_k = h_full[:, :k]                                              # (tm, k)
    ld_ref[...] = jnp.log(jnp.abs(1.0 + (1.0 - h_k * h_k) * wtu))


def _planar_flow_kernel(scal_ref, x_ref, w_ref, u_ref, out_ref, ld_ref):
    """Generic (unpacked) path: x tile is (tile_n, d)."""
    b = scal_ref[0]
    wtu = scal_ref[1]

    xf = x_ref[...].astype(jnp.float32)                              # (tn, d)
    w = w_ref[...]                                                   # (1, d)
    u = u_ref[...]                                                   # (1, d)

    # VPU multiply + XLU lane reduction (MXU deliberately unused: width-1 output).
    lin = jnp.sum(xf * w, axis=-1, keepdims=True) + b                # (tn, 1)
    h = jnp.tanh(lin)
    out_ref[...] = (xf + h * u).astype(out_ref.dtype)
    ld_ref[...] = jnp.log(jnp.abs(1.0 + (1.0 - h * h) * wtu))


# ---------------------------------------------------------------------------
# Tiling helpers
# ---------------------------------------------------------------------------
def _physical_vmem_bytes():
    try:
        info = pltpu.get_tpu_info()
        v = getattr(info, "vmem_capacity_bytes", None)
        if v:
            return int(v)
    except Exception:
        pass
    return 64 * 1024 * 1024  # conservative fallback: v7x per-TensorCore VMEM


def _pick_tile_rows(n_rows, row_bytes_pipelined, budget_bytes, user_rows=None):
    """Rows per block: multiple of 8 unless it covers the full extent, and at
    least 2 grid steps when there is enough work (v7x megacore sharding)."""
    if user_rows is not None:
        t = max(_SUBLANES, (int(user_rows) // _SUBLANES) * _SUBLANES)
        return min(t, n_rows)
    t = max(_SUBLANES,
            (budget_bytes // max(1, row_bytes_pipelined)) // _SUBLANES * _SUBLANES)
    if t < n_rows:
        return t
    # Budget covers the whole problem: still split into two balanced blocks when
    # possible so ("parallel",) can shard across both v7x TensorCores.
    if n_rows >= 2 * _SUBLANES:
        half = -(-n_rows // 2)
        return (-(-half // _SUBLANES)) * _SUBLANES
    return n_rows


# ---------------------------------------------------------------------------
# Wrapper
# ---------------------------------------------------------------------------
def single_planar_flow(x, u, w, b, *, block_rows=None):
    """Forward of SinglePlanarFlow.

    Returns (out, log_det_jacobian): out (N, d) in x.dtype, log_det (N, 1) f32.
    block_rows optionally overrides the rows-per-block of the internal row-tiled
    view (packed rows when the lane-packed layout is used); rounded to 8.
    """
    N, d = x.shape

    # ---- parameter-only u_hat correction (data independent, stays in glue) ----
    wf = w.astype(jnp.float32).reshape(1, d)
    uf = u.astype(jnp.float32).reshape(1, d)
    wtu = jnp.sum(wf * uf)                                  # w @ u.T
    m_wtu = -1.0 + jnp.log1p(jnp.exp(wtu))
    u_hat = jnp.where(wtu < 1.0, uf + (m_wtu - wtu) * wf / jnp.sum(wf * wf), uf)
    wtu_hat = jnp.sum(wf * u_hat)                           # w @ u_hat.T (loop invariant)
    scalars = jnp.stack(
        [jnp.reshape(b, ()).astype(jnp.float32), wtu_hat])  # (2,) -> SMEM

    phys_vmem = _physical_vmem_bytes()
    # Total pipelined-block budget (already counts double buffering below).
    budget = min(int(phys_vmem * 0.55), 48 * 1024 * 1024)
    isz = jnp.dtype(x.dtype).itemsize
    sem = pltpu.CompilerParams  # alias for brevity below

    packable = (d < _LANES) and (_LANES % d == 0) and (N % (_LANES // d) == 0)

    if packable:
        # -------------------- lane-packed primary path ----------------------
        k = _LANES // d
        M = N // k
        x_packed = x.reshape(M, _LANES)                     # free row-major view

        # Block-diagonal selectors (parameter-only, built once in glue).
        lane = np.arange(_LANES)
        onehot = (lane[:, None] // d == lane[None, :]).astype(np.float32)  # (128,128)
        w_rep = jnp.tile(wf.reshape(d), k)                  # w[l % d]
        u_rep = jnp.tile(u_hat.reshape(d), k)               # u_hat[l % d]
        s_w = onehot * w_rep[:, None]                       # (128, 128)
        s_u = onehot.T * u_rep[None, :]                     # (128, 128)

        # Double-buffered x + out + (lane-padded) log_det blocks per grid step.
        row_bytes = 2 * (2 * _LANES * isz + _LANES * 4)
        tile = _pick_tile_rows(M, row_bytes, budget, block_rows)
        grid = (pl.cdiv(M, tile),)                          # ragged last block OK
        needed = tile * row_bytes + 4 * _LANES * _LANES * 4 + (4 << 20)
        vmem_limit = int(min(phys_vmem, max(needed, 32 * 1024 * 1024)))

        out_p, ld_p = pl.pallas_call(
            functools.partial(_planar_flow_packed_kernel, k=k),
            out_shape=(
                jax.ShapeDtypeStruct((M, _LANES), x.dtype),
                jax.ShapeDtypeStruct((M, k), jnp.float32),
            ),
            grid_spec=pltpu.PrefetchScalarGridSpec(
                num_scalar_prefetch=0,
                grid=grid,
                in_specs=[
                    pl.BlockSpec(memory_space=pltpu.MemorySpace.SMEM),  # [b, wtu]
                    pl.BlockSpec((tile, _LANES), lambda i: (i, 0)),     # packed x
                    pl.BlockSpec((_LANES, _LANES), lambda i: (0, 0)),   # s_w
                    pl.BlockSpec((_LANES, _LANES), lambda i: (0, 0)),   # s_u
                ],
                out_specs=[
                    pl.BlockSpec((tile, _LANES), lambda i: (i, 0)),     # packed out
                    pl.BlockSpec((tile, k), lambda i: (i, 0)),          # log|det J|
                ],
            ),
            compiler_params=sem(
                dimension_semantics=("parallel",),
                vmem_limit_bytes=vmem_limit),
        )(scalars, x_packed, s_w, s_u)

        # Free reshapes back to the logical layout.
        return out_p.reshape(N, d), ld_p.reshape(N, 1)

    # -------------------- generic fallback path -----------------------------
    d_pad = (-(-d // _LANES)) * _LANES                      # lane-padded width in VMEM
    row_bytes = 2 * (2 * d_pad * isz + _LANES * 4)
    tile = _pick_tile_rows(N, row_bytes, budget, block_rows)
    grid = (pl.cdiv(N, tile),)                              # ragged last block OK
    needed = tile * row_bytes + (4 << 20)
    vmem_limit = int(min(phys_vmem, max(needed, 32 * 1024 * 1024)))

    out, ld = pl.pallas_call(
        _planar_flow_kernel,
        out_shape=(
            jax.ShapeDtypeStruct((N, d), x.dtype),
            jax.ShapeDtypeStruct((N, 1), jnp.float32),
        ),
        grid_spec=pltpu.PrefetchScalarGridSpec(
            num_scalar_prefetch=0,
            grid=grid,
            in_specs=[
                pl.BlockSpec(memory_space=pltpu.MemorySpace.SMEM),      # [b, wtu]
                pl.BlockSpec((tile, d), lambda i: (i, 0)),              # x tile
                pl.BlockSpec((1, d), lambda i: (0, 0)),                 # w
                pl.BlockSpec((1, d), lambda i: (0, 0)),                 # u_hat
            ],
            out_specs=[
                pl.BlockSpec((tile, d), lambda i: (i, 0)),              # out tile
                pl.BlockSpec((tile, 1), lambda i: (i, 0)),              # log|det J|
            ],
        ),
        compiler_params=sem(
            dimension_semantics=("parallel",),
            vmem_limit_bytes=vmem_limit),
    )(scalars, x, wf, u_hat)
    return out, ld


# ---------------------------------------------------------------------------
# Pure-JAX reference
# ---------------------------------------------------------------------------
def reference(x, u, w, b):
    wtu = jnp.sum(w * u)
    m_wtu = -1.0 + jnp.log1p(jnp.exp(wtu))
    u_hat = jnp.where(wtu < 1.0, u + (m_wtu - wtu) * w / jnp.sum(w * w), u)
    lin = x @ w.T + b                                       # (N, 1)
    out = x + jnp.tanh(lin) @ u_hat
    psi = (1.0 - jnp.tanh(lin) ** 2) * w
    log_det = jnp.log(jnp.abs(1.0 + psi @ u_hat.T))
    return out, log_det


if __name__ == "__main__":
    d, N = 32, 64
    key = jax.random.PRNGKey(0)
    kx, ku, kw, kb = jax.random.split(key, 4)

    bound = float(np.sqrt(1.0 / d))
    u = jax.random.uniform(ku, (1, d), jnp.float32, -bound, bound)
    w = jax.random.uniform(kw, (1, d), jnp.float32, -bound, bound)
    b = jax.random.uniform(kb, (1,), jnp.float32, -bound, bound)
    x = jax.random.normal(kx, (N, d), jnp.float32)

    # Lane-packed primary path (auto tiles -> >= 2 grid steps).
    out, ld = single_planar_flow(x, u, w, b)
    out, ld = jax.block_until_ready((out, ld))
    out_r, ld_r = reference(x, u, w, b)
    # Selector matmuls go through the MXU; allow for reduced-precision passes.
    assert out.shape == (N, d) and ld.shape == (N, 1)
    assert jnp.allclose(out, out_r, atol=2e-3, rtol=2e-3)
    assert jnp.allclose(ld, ld_r, atol=2e-3, rtol=2e-3)

    # Packed path with a ragged last block (M=18 packed rows, tile 8 -> 3 steps).
    N2 = 72
    x2 = jax.random.normal(jax.random.PRNGKey(1), (N2, d), jnp.float32)
    out2, ld2 = single_planar_flow(x2, u, w, b, block_rows=8)
    out2, ld2 = jax.block_until_ready((out2, ld2))
    out2_r, ld2_r = reference(x2, u, w, b)
    assert jnp.allclose(out2, out2_r, atol=2e-3, rtol=2e-3)
    assert jnp.allclose(ld2, ld2_r, atol=2e-3, rtol=2e-3)

    # Generic fallback (d does not divide 128) with a ragged grid (no MXU).
    d3, N3 = 40, 37
    k3 = jax.random.split(jax.random.PRNGKey(2), 4)
    u3 = jax.random.uniform(k3[0], (1, d3), jnp.float32, -0.15, 0.15)
    w3 = jax.random.uniform(k3[1], (1, d3), jnp.float32, -0.15, 0.15)
    b3 = jax.random.uniform(k3[2], (1,), jnp.float32, -0.15, 0.15)
    x3 = jax.random.normal(k3[3], (N3, d3), jnp.float32)
    out3, ld3 = single_planar_flow(x3, u3, w3, b3, block_rows=16)
    out3, ld3 = jax.block_until_ready((out3, ld3))
    out3_r, ld3_r = reference(x3, u3, w3, b3)
    assert jnp.allclose(out3, out3_r, atol=1e-5, rtol=1e-5)
    assert jnp.allclose(ld3, ld3_r, atol=1e-5, rtol=1e-5)

    print("KERNEL_OK")
</pallas_src>

<mosaic_0001>
module attributes {stable_mosaic.version = 11 : i64} {
  func.func @_planar_flow_packed_kernel(%arg0: i32, %arg1: memref<2xf32, #tpu.memory_space<smem>>, %arg2: memref<8x128xf32, #tpu.memory_space<vmem>>, %arg3: memref<128x128xf32, #tpu.memory_space<vmem>>, %arg4: memref<128x128xf32, #tpu.memory_space<vmem>>, %arg5: memref<8x128xf32, #tpu.memory_space<vmem>>, %arg6: memref<8x4xf32, #tpu.memory_space<vmem>>) attributes {dimension_semantics = [#tpu.dimension_semantics<parallel>], iteration_bounds = array<i64: 2>, scalar_prefetch = 0 : i64, scratch_operands = 0 : i64, tpu.core_type = #tpu.core_type<tc>, window_params = [{transform_indices = @transform_0, window_bounds = array<i64: 2>}, {transform_indices = @transform_1, window_bounds = array<i64: 8, 128>}, {pipeline_mode = #tpu.pipeline_mode<synchronous>, transform_indices = @transform_2, window_bounds = array<i64: 128, 128>}, {pipeline_mode = #tpu.pipeline_mode<synchronous>, transform_indices = @transform_3, window_bounds = array<i64: 128, 128>}, {transform_indices = @transform_4, window_bounds = array<i64: 8, 128>}, {transform_indices = @transform_5, window_bounds = array<i64: 8, 4>}]} {
    %c0 = arith.constant 0 : index
    %0 = memref.load %arg1[%c0] : memref<2xf32, #tpu.memory_space<smem>>
    %c1 = arith.constant 1 : index
    %1 = memref.load %arg1[%c1] : memref<2xf32, #tpu.memory_space<smem>>
    %c0_0 = arith.constant 0 : index
    %c0_1 = arith.constant 0 : index
    %2 = vector.load %arg2[%c0_0, %c0_1] : memref<8x128xf32, #tpu.memory_space<vmem>>, vector<8x128xf32>
    %c0_2 = arith.constant 0 : index
    %c0_3 = arith.constant 0 : index
    %3 = vector.load %arg3[%c0_2, %c0_3] : memref<128x128xf32, #tpu.memory_space<vmem>>, vector<128x128xf32>
    %cst = arith.constant dense<0.000000e+00> : vector<8x128xf32>
    %4 = tpu.matmul %2, %3, %cst {dimension_numbers = #tpu.dot_dimension_numbers<[1], [0], [0], [1], [0, 0, 1, 1], [], []>} : vector<8x128xf32>, vector<128x128xf32>, vector<8x128xf32> -> vector<8x128xf32>
    %5 = vector.broadcast %0 : f32 to vector<8x128xf32>
    %6 = arith.addf %4, %5 : vector<8x128xf32>
    %7 = math.tanh %6 : vector<8x128xf32>
    %c0_4 = arith.constant 0 : index
    %c0_5 = arith.constant 0 : index
    %8 = vector.load %arg4[%c0_4, %c0_5] : memref<128x128xf32, #tpu.memory_space<vmem>>, vector<128x128xf32>
    %cst_6 = arith.constant dense<0.000000e+00> : vector<8x128xf32>
    %9 = tpu.matmul %7, %8, %cst_6 {dimension_numbers = #tpu.dot_dimension_numbers<[1], [0], [0], [1], [0, 0, 1, 1], [], []>} : vector<8x128xf32>, vector<128x128xf32>, vector<8x128xf32> -> vector<8x128xf32>
    %10 = arith.addf %2, %9 : vector<8x128xf32>
    %c0_7 = arith.constant 0 : index
    %c0_8 = arith.constant 0 : index
    %11 = vector.load %arg5[%c0_7, %c0_8] : memref<8x128xf32, #tpu.memory_space<vmem>>, vector<8x128xf32>
    tpu.vector_store %arg5[%c0_7, %c0_8], %10 {strides = array<i32>} : memref<8x128xf32, #tpu.memory_space<vmem>>, vector<8x128xf32>,
    %12 = vector.extract_strided_slice %7 {offsets = [0, 0], sizes = [8, 4], strides = [1, 1]} : vector<8x128xf32> to vector<8x4xf32>
    %13 = arith.mulf %12, %12 : vector<8x4xf32>
    %cst_9 = arith.constant 1.000000e+00 : f32
    %14 = vector.broadcast %cst_9 : f32 to vector<8x4xf32>
    %15 = arith.subf %14, %13 : vector<8x4xf32>
    %16 = vector.broadcast %1 : f32 to vector<8x4xf32>
    %17 = arith.mulf %15, %16 : vector<8x4xf32>
    %cst_10 = arith.constant 1.000000e+00 : f32
    %18 = vector.broadcast %cst_10 : f32 to vector<8x4xf32>
    %19 = arith.addf %18, %17 : vector<8x4xf32>
    %20 = math.absf %19 : vector<8x4xf32>
    %21 = math.log %20 : vector<8x4xf32>
    %c0_11 = arith.constant 0 : index
    %c0_12 = arith.constant 0 : index
    %22 = vector.load %arg6[%c0_11, %c0_12] : memref<8x4xf32, #tpu.memory_space<vmem>>, vector<8x4xf32>
    tpu.vector_store %arg6[%c0_11, %c0_12], %21 {strides = array<i32>} : memref<8x4xf32, #tpu.memory_space<vmem>>, vector<8x4xf32>,
    return
  }
  func.func @transform_0(%arg0: i32) -> i32 {
    %c0_i32 = arith.constant 0 : i32
    %c0_i32_0 = arith.constant 0 : i32
    return %c0_i32 : i32
  }
  func.func @transform_1(%arg0: i32) -> (i32, i32) {
    %c0_i32 = arith.constant 0 : i32
    %c0_i32_0 = arith.constant 0 : i32
    return %arg0, %c0_i32 : i32, i32
  }
  func.func @transform_2(%arg0: i32) -> (i32, i32) {
    %c0_i32 = arith.constant 0 : i32
    %c0_i32_0 = arith.constant 0 : i32
    %c0_i32_1 = arith.constant 0 : i32
    return %c0_i32, %c0_i32_0 : i32, i32
  }
  func.func @transform_3(%arg0: i32) -> (i32, i32) {
    %c0_i32 = arith.constant 0 : i32
    %c0_i32_0 = arith.constant 0 : i32
    %c0_i32_1 = arith.constant 0 : i32
    return %c0_i32, %c0_i32_0 : i32, i32
  }
  func.func @transform_4(%arg0: i32) -> (i32, i32) {
    %c0_i32 = arith.constant 0 : i32
    %c0_i32_0 = arith.constant 0 : i32
    return %arg0, %c0_i32 : i32, i32
  }
  func.func @transform_5(%arg0: i32) -> (i32, i32) {
    %c0_i32 = arith.constant 0 : i32
    %c0_i32_0 = arith.constant 0 : i32
    return %arg0, %c0_i32 : i32, i32
  }
}

</mosaic_0001>

<bundles_post_ra>
// kernel: tpu_custom_call.1
= control target key start
LH: loop header
LB: loop body
LE: loop exit
PB: predicated region body
PF: predicated region fallthrough
CT: control target
= control target key end

     0   :  { %11 = vsyncpa [#allocation5], 0  ;;  %s1383_s0 = inlined_call_operand.hbm [shape: f32[2], index: 0, kind: input, shape index: {}]   ;;  %s1384_s1 = inlined_call_operand.hbm [shape: f32[16,128], index: 1, kind: input, shape index: {}]   ;;  %s1385_s2 = inlined_call_operand.hbm [shape: f32[128,128], index: 2, kind: input, shape index: {}]   ;;  %s1386_s3 = inlined_call_operand.hbm [shape: f32[128,128], index: 3, kind: input, shape index: {}]   ;;  %s1387_s4 = inlined_call_operand.hbm [shape: f32[16,128], index: 4, kind: output, shape index: {0}]   ;;  %s1388_s5 = inlined_call_operand.vmem [shape: f32[16,4], index: 5, kind: output, shape index: {1}]  }
   0x1   :  { %12 = vsyncpa [#allocation3], 0 }
   0x2   :  { %14 = vsyncpa [#allocation3 + $0x1], 0 }
   0x3   :  { %15 = vsyncpa [#allocation8], 0 }
   0x4   :  { %16 = vsyncpa [#allocation4], 0 }
   0x5   :  { %18 = vsyncpa [#allocation4 + $0x1], 0  ;;  %s1100_s18 = smov 0   ;;  %s1102_s19 = smov 0  }
   0x6   :  { %s1104_s20 = smov 0   ;;  %s1106_s21 = smov 0  }
   0x7 LB: > { %s1121_s22 = sadd.s32 4294967295, %s1058_s21   ;;  %s627_s23 = sadd.s32 4294967294, %s1058_s21   ;;  %s1058_s21 = sphi %s1106_s21, %s1411_s21   ;;  %s1054_s20 = sphi %s1104_s20, %s1410_s20   ;;  %s1050_s19 = sphi %s1102_s19, %s1409_s19   ;;  %s1046_s18 = sphi %s1100_s18, %s1408_s18  }
   0x8   : > { %p65_p0 = scmp.ne.s32.totalorder %s1050_s19, %s1046_s18  ;;  %p1389_p1 = scmp.eq.s32.totalorder %s1121_s22, 0 }
   0x9   : > { %p137_p3 = scmp.eq.s32.totalorder %s627_s23, 1  ;;  %p628_p5 = scmp.ge.s32.totalorder %s1058_s21, 1 }
   0xa   : > { %p1130_p4 = por %p1389_p1, %p65_p0  ;;  %p170_p7 = scmp.lt.s32.totalorder %s1058_s21, 3 }
   0xb   : > { %p1135_p6 = por %p137_p3, %p65_p0  ;;  %s1060_s27 = smov [#allocation7]  }
   0xc   : > { %s1392_s24 = scalar_select %p1130_p4, 1, 0 }
   0xd   : > { %s1393_s25 = scalar_select %p1135_p6, 1, 0 }
   0xe   : > { %p1140_p8 = pnand %p628_p5, %p170_p7  ;;  %s191_s28 = sshll.u32 %s1060_s27, 4  ;;  %s1144_s28 = int_to_ptr.vmem [resolvable:$true] %s191_s28 }
   0xf   : > { %s1061_s30 = smov [#allocation9]   ;;  %s885_s9 = scalar_lea.hbm %s1385_s2, 2048 }
  0x10   : > { %p815_p9 = pneg %p1140_p8  ;;  %s204_s6 = sshll.u32 %s1061_s30, 4  ;;  %s1155_s6 = int_to_ptr.vmem [resolvable:$true] %s204_s6 }
  0x11   : > { %p886_p12 = scmp.ne.s32.totalorder %s1385_s2, %s885_s9  ;;  %p892_p5 = scmp.lt.u32.totalorder %s885_s9, %s1385_s2 }
  0x12   : > { %p1151_p11 = pnand %p815_p9, %p1389_p1 }
  0x14   : > { %p1165_p13 = pneg %p1151_p11 }
  0x16   : > { %p888_p0 = pnand %p1165_p13, %p886_p12 }
  0x18   : > { %p889_p3 = pneg %p888_p0 }
  0x1a   : > { %p894_p7 = pnand %p892_p5, %p889_p3 }
  0x1c   : > { %897 = shalt.err (!%p894_p7)
}
  0x1d   : > { %s898_s15 = scalar_lea.vmem %s1144_s28, 2048  ;;  %p906_p2 = scmp.lt.s32.totalorder %s1144_s28, %s1144_s28 }
  0x1e   : > { %p899_p9 = scmp.ne.s32.totalorder %s1144_s28, %s898_s15  ;;  %p907_p6 = scmp.lt.s32.totalorder %s898_s15, %s898_s15 }
  0x20   : > { %p901_p10 = pnand %p899_p9, %p1165_p13  ;;  %p908_p12 = por %p907_p6, %p906_p2 }
  0x22   : > { %p902_p1 = pneg %p901_p10 }
  0x24   : > { %p909_p0 = pnand %p908_p12, %p902_p1 }
  0x26   : > { %912 = shalt.err (!%p909_p0)
}
  0x27   : > { %s1062_s16 = smov 128   ;;  %s1063_s17 = smov 8  }
  0x28   : > { %821 = dma.hbm_to_vmem [thread:$0]  (!%p1151_p11), %s1385_s2, 2048, %s1144_s28, [#allocation8], %s1062_s16, %s1062_s16, %s1063_s17  }
  0x29   : > { %s913_s8 = scalar_lea.hbm %s1383_s0, 16 }
  0x2a   : > { %p914_p1 = scmp.ne.s32.totalorder %s1383_s0, %s913_s8  ;;  %p920_p10 = scmp.lt.u32.totalorder %s913_s8, %s1383_s0 }
  0x2c   : > { %p916_p2 = pnand %p914_p1, %p1165_p13 }
  0x2e   : > { %p917_p6 = pneg %p916_p2 }
  0x30   : > { %p922_p3 = pnand %p920_p10, %p917_p6 }
  0x32   : > { %925 = shalt.err (!%p922_p3)
}
  0x33   : > { %s1064_s14 = smov [#allocation2]   ;;  %s926_s30 = scalar_lea.hbm %s1386_s3, 2048 }
  0x34   : > { %818 = dma.hbm_to_smem (!%p1151_p11), %s1383_s0, 16, %s1064_s14, [#allocation5]  }
  0x35   : > { %p927_p5 = scmp.ne.s32.totalorder %s1386_s3, %s926_s30  ;;  %p933_p12 = scmp.lt.u32.totalorder %s926_s30, %s1386_s3 }
  0x37   : > { %p929_p7 = pnand %p927_p5, %p1165_p13 }
  0x39   : > { %p930_p9 = pneg %p929_p7 }
  0x3b   : > { %p935_p0 = pnand %p933_p12, %p930_p9 }
  0x3d   : > { %938 = shalt.err (!%p935_p0)
}
  0x3e   : > { %s939_s11 = scalar_lea.vmem %s1155_s6, 2048  ;;  %p947_p10 = scmp.lt.s32.totalorder %s1155_s6, %s1155_s6 }
  0x3f   : > { %p940_p1 = scmp.ne.s32.totalorder %s1155_s6, %s939_s11  ;;  %p948_p3 = scmp.lt.s32.totalorder %s939_s11, %s939_s11 }
  0x41   : > { %p942_p2 = pnand %p940_p1, %p1165_p13  ;;  %p949_p5 = por %p948_p3, %p947_p10 }
  0x43   : > { %p943_p6 = pneg %p942_p2 }
  0x45   : > { %p950_p7 = pnand %p949_p5, %p943_p6 }
  0x47   : > { %953 = shalt.err (!%p950_p7)
}
  0x48   : > { %824 = dma.hbm_to_vmem [thread:$0]  (!%p1151_p11), %s1386_s3, 2048, %s1155_s6, [#allocation8], %s1062_s16, %s1062_s16, %s1063_s17  }
  0x49   : > { %s1232_s29 = sadd.s32 1, %s1058_s21   ;;  %s52_s28 = sadd.s32 1, %s1054_s20 }
  0x4a   : > { %s49_s12 = ssub.s32 %s1058_s21, %s1232_s29  ;;  %p59_p9 = scmp.ne.s32.totalorder %s1054_s20, %s1050_s19 }
  0x4b   : > { %p50_p13 = scmp.eq.s32.totalorder %s49_s12, 0  ;;  %p60_p12 = scmp.eq.s32.totalorder %s1058_s21, 0 }
  0x4c   : > { %p836_p0 = scmp.lt.s32.totalorder %s1058_s21, 2  ;;  %p1397_p2 = scmp.eq.s32.totalorder %s1121_s22, 1 }
  0x4d   : > { %s1242_s15 = scalar_select %p50_p13, %s1054_s20, %s52_s28  }
  0x4e   : > { %p61_p1 = por %p60_p12, %p59_p9  ;;  %p1246_p6 = por %p1397_p2, %p59_p9 }
  0x4f   : > { %s218_s27 = sand.u32 1, %s1054_s20   ;;  %s634_s30 = sshll.u32 %s1058_s21, 7 }
  0x50   : > { %s1398_s23 = scalar_select %p1246_p6, 1, 0 }
  0x51   : > { %s633_s6 = sshll.u32 %s218_s27, 3  ;;  %s1255_s7 = scalar_lea.hbm %s1384_s1, %s634_s30 }
  0x52   : > { %s222_s9 = scalar_lea.vmem [#allocation6], %s633_s6  ;;  %p1257_p11 = pnand %p836_p0, %p61_p1 }
  0x53   : > { %s229_s8 = sshll.u32 %s222_s9, 4  ;;  %s219_s11 = scalar_lea.sflag [#allocation3], %s218_s27  ;;  %s1261_s8 = int_to_ptr.vmem [resolvable:$true] %s229_s8 }
  0x54   : > { %s954_s13 = scalar_lea.hbm %s1255_s7, 128  ;;  %p956_p3 = pneg %p1257_p11 }
  0x55   : > { %p955_p10 = scmp.ne.s32.totalorder %s1255_s7, %s954_s13  ;;  %s959_s28 = scalar_lea.hbm %s1384_s1, 256 }
  0x56   : > { %p960_p13 = scmp.lt.u32.totalorder %s1255_s7, %s1384_s1  ;;  %p961_p9 = scmp.lt.u32.totalorder %s959_s28, %s954_s13 }
  0x57   : > { %p957_p5 = pnand %p956_p3, %p955_p10  ;;  %p963_p0 = scmp.lt.u32.totalorder %s954_s13, %s1255_s7 }
  0x58   : > { %p962_p12 = por %p961_p9, %p960_p13 }
  0x59   : > { %p958_p7 = pneg %p957_p5 }
  0x5a   : > { %p964_p1 = por %p963_p0, %p962_p12 }
  0x5c   : > { %p965_p2 = pnand %p964_p1, %p958_p7 }
  0x5e   : > { %968 = shalt.err (!%p965_p2)
}
  0x5f   : > { %s969_s27 = scalar_lea.vmem %s1261_s8, 128  ;;  %s1065_s16 = smov [#allocation6]  }
  0x60   : > { %p970_p10 = scmp.ne.s32.totalorder %s1261_s8, %s969_s27  ;;  %s974_s17 = sshll.u32 %s1065_s16, 4  ;;  %s975_s17 = int_to_ptr.vmem [resolvable:$false] %s974_s17 }
  0x61   : > { %s976_s9 = scalar_lea.vmem %s975_s17, 256  ;;  %p977_p4 = scmp.lt.s32.totalorder %s1261_s8, %s975_s17 }
  0x62   : > { %p972_p5 = pnand %p970_p10, %p956_p3  ;;  %p978_p13 = scmp.lt.s32.totalorder %s976_s9, %s969_s27 }
  0x64   : > { %p973_p6 = pneg %p972_p5  ;;  %p979_p9 = por %p978_p13, %p977_p4 }
  0x66   : > { %p980_p12 = pnand %p979_p9, %p973_p6 }
  0x68   : > { %983 = shalt.err (!%p980_p12)
}
  0x69   : > { %828 = dma.hbm_to_vmem [thread:$0]  (!%p1257_p11), %s1255_s7, 128, %s1261_s8, %s219_s11  }
  0x6a   : > { %238 = sbr.rel (%p1140_p8) target bundleno = 610 (0x262), region = 36  ;;  %p1400_p3 = scmp.eq.s32.totalorder (!%p1140_p8), %s1121_s22, 0 }
  0x71   : > { %1029 = dma.done.wait (%p1400_p3), [#allocation5], 16   ;;  %p1401_p7 = pmov %p1400_p3 }
  0x72   : > { %s1295_s13 = sand.u32 1, %s1050_s19   ;;  %p1402_p4 = scmp.ne.s32.totalorder %s1392_s24, 0 }
  0x73   : > { %1031 = vsyncadd (%p1401_p7), [#allocation5], 4294967280  ;;  %s637_s10 = sshll.u32 %s1295_s13, 3  ;;  %s245_s14 = scalar_lea.sflag [#allocation3], %s1295_s13 }
  0x74   : > { %s1301_s7 = scalar_lea.vmem [#allocation6], %s637_s10 }
  0x75   : > { %1033 = dma.done.wait (%p1402_p4), %s245_s14, 128  }
  0x76   : > { %1035 = vsyncadd (%p1402_p4), %s245_s14, 4294967168  ;;  %p1403_p8 = pmov %p1400_p3 }
  0x77   : > { %p1404_p6 = pmov %p1400_p3 }
  0x78   : > { %1037 = dma.done.wait (%p1403_p8), [#allocation8], 4096  }
  0x79   : > { %1039 = vsyncadd (%p1404_p6), [#allocation8], 4294963200 }
  0x7a   : > { %261 = sfence }
  0x7b   : > { %v295_v0 = vld [vmem:[#allocation7] sm:$0xff]  ;;  %v296_v1 = vld [vmem:[#allocation7 + $0x8] sm:$0xff]  ;;  %v297_v2 = vld [vmem:[#allocation7 + $0x10] sm:$0xff]  ;;  %v1066_v3 = vmov 0.0|0.0   ;;  %vm1067_vm0 = vmmov 0   ;;  %v1068_v6 = vmov 0.0  }
  0x7c   : > { %751 = vmatprep.subr.bf16.mxu0 %v1066_v3  ;;  %v752_v4 = vpack.c.bf16 %v296_v1, %v295_v0  ;;  %v298_v5 = vld [vmem:[#allocation7 + $0x18] sm:$0xff]  ;;  %713 = vmatprep.mubr.msk.f32.mxu0 %vm1067_vm0, %v1068_v6  ;;  %v299_v8 = vld [vmem:[#allocation7 + $0x20] sm:$0xff]  ;;  %v300_v9 = vld [vmem:[#allocation7 + $0x28] sm:$0xff]  ;;  %s292_s24 = sld [smem:[#allocation2]]  ;;  %s642_s26 = sld [smem:[#allocation2 + $0x1]]  ;;  %vm479_vm1 = vcmask 31744  }
  0x7d   : > { %775 = vmatprep.subr.bf16.mxu1 %v1066_v3  ;;  %748 = vmatprep.mubr.msk.f32.mxu1 %vm1067_vm0, %v1068_v6  ;;  %v755_v7 = vpack.c.bf16 %v298_v5, %v297_v2  ;;  %v383_v10 = vld [vmem:[#allocation9] sm:$0xff]  ;;  %v384_v11 = vld [vmem:[#allocation9 + $0x8] sm:$0xff]  ;;  %v385_v12 = vld [vmem:[#allocation9 + $0x10] sm:$0xff]  ;;  %v758_v14 = vpack.c.bf16 %v300_v9, %v299_v8  ;;  %p288_p11 = scmp.lt.s32.totalorder %s1121_s22, 1  ;;  %s644_s6 = sshll.u32 %s1121_s22, 7 }
  0x7e   : > { %753 = vmatpush3.bf16.msra.mxu0 %v752_v4  ;;  %v386_v13 = vld [vmem:[#allocation9 + $0x18] sm:$0xff]  ;;  %v776_v15 = vpack.c.bf16 %v384_v11, %v383_v10  ;;  %v301_v16 = vld [vmem:[#allocation7 + $0x30] sm:$0xff]  ;;  %v387_v19 = vld [vmem:[#allocation9 + $0x20] sm:$0xff]  ;;  %s281_s27 = scalar_lea.vmem [#allocation10], %s637_s10  ;;  %s1339_s14 = scalar_lea.hbm %s1387_s4, %s644_s6 }
  0x7f   : > { %754 = vmatprep.subr.bf16.mxu0 %v1066_v3  ;;  %v302_v17 = vld [vmem:[#allocation7 + $0x38] sm:$0xff]  ;;  %v779_v18 = vpack.c.bf16 %v386_v13, %v385_v12  ;;  %v388_v20 = vld [vmem:[#allocation9 + $0x28] sm:$0xff]  ;;  %v303_v22 = vld [vmem:[#allocation7 + $0x40] sm:$0xff]  ;;  %s289_s8 = scalar_select %p288_p11, %s1121_s22, 1 }
  0x80   : > { %777 = vmatpush3.bf16.msra.mxu1 %v776_v15  ;;  %v761_v21 = vpack.c.bf16 %v302_v17, %v301_v16  ;;  %v304_v23 = vld [vmem:[#allocation7 + $0x48] sm:$0xff]  ;;  %v782_v24 = vpack.c.bf16 %v388_v20, %v387_v19  ;;  %v389_v25 = vld [vmem:[#allocation9 + $0x30] sm:$0xff]  ;;  %v390_v26 = vld [vmem:[#allocation9 + $0x38] sm:$0xff]  ;;  %s499_s16 = sshll.u32 %s281_s27, 4  ;;  %p1405_p1 = scmp.ne.s32.totalorder %s1398_s23, 0  ;;  %s1341_s16 = int_to_ptr.vmem [resolvable:$true] %s499_s16 }
  0x81   : > { %778 = vmatprep.subr.bf16.mxu1 %v1066_v3  ;;  %v764_v27 = vpack.c.bf16 %v304_v23, %v303_v22  ;;  %v305_v28 = vld [vmem:[#allocation7 + $0x50] sm:$0xff]  ;;  %v306_v29 = vld [vmem:[#allocation7 + $0x58] sm:$0xff]  ;;  %v785_v30 = vpack.c.bf16 %v390_v26, %v389_v25  ;;  %v391_v31 = vld [vmem:[#allocation9 + $0x40] sm:$0xff]  ;;  %s641_s11 = sshll.u32 %s289_s8, 3  ;;  %s1069_s22 = smov [#allocation10]  }
  0x82   : > { %756 = vmatpush3.bf16.msra.mxu0 %v755_v7  ;;  %v392_v32 = vld [vmem:[#allocation9 + $0x48] sm:$0xff]  ;;  %v767_v33 = vpack.c.bf16 %v306_v29, %v305_v28  ;;  %v307_v34 = vld [vmem:[#allocation7 + $0x60] sm:$0xff]  ;;  %v309_v38 = vld [vmem:[#allocation7 + $0x70] sm:$0xff]  ;;  %v311_v51 = vstv %s292_s24  ;;  %v473_v57 = vstv %s642_s26  ;;  %s291_s30 = scalar_lea.vmem %s1388_s5, %s641_s11  ;;  %s984_s24 = scalar_lea.vmem %s1341_s16, 128 }
  0x83   : > { %757 = vmatprep.subr.bf16.mxu0 %v1066_v3  ;;  %v308_v35 = vld [vmem:[#allocation7 + $0x68] sm:$0xff]  ;;  %v788_v36 = vpack.c.bf16 %v392_v32, %v391_v31  ;;  %v310_v39 = vld [vmem:[#allocation7 + $0x78] sm:$0xff]  ;;  %v393_v42 = vld [vmem:[#allocation9 + $0x50] sm:$0xff]  ;;  %p985_p0 = scmp.ne.s32.totalorder %s1341_s16, %s984_s24  ;;  %s988_s10 = sshll.u32 %s1069_s22, 4  ;;  %s989_s10 = int_to_ptr.vmem [resolvable:$false] %s988_s10 }
  0x84   : > { %780 = vmatpush3.bf16.msra.mxu1 %v779_v18  ;;  %v770_v37 = vpack.c.bf16 %v308_v35, %v307_v34  ;;  %v773_v40 = vpack.c.bf16 %v310_v39, %v309_v38  ;;  %v294_v41 = vld [vmem:[%s1301_s7] sm:$0xff]  ;;  %v395_v45 = vld [vmem:[#allocation9 + $0x60] sm:$0xff]  ;;  %v396_v46 = vld [vmem:[#allocation9 + $0x68] sm:$0xff]  ;;  %s482_s7 = scalar_lea.sflag [#allocation4], %s1295_s13  ;;  %s990_s26 = scalar_lea.vmem %s989_s10, 256 }
  0x85   : > { %781 = vmatprep.subr.bf16.mxu1 %v1066_v3  ;;  %v394_v43 = vld [vmem:[#allocation9 + $0x58] sm:$0xff]  ;;  %v794_v47 = vpack.c.bf16 %v396_v46, %v395_v45  ;;  %v397_v48 = vld [vmem:[#allocation9 + $0x70] sm:$0xff]  ;;  %p986_p2 = pnand %p985_p0, %p1405_p1  ;;  %p991_p5 = scmp.lt.s32.totalorder %s1341_s16, %s989_s10 }
  0x86   : > { %759 = vmatpush3.bf16.msra.mxu0 %v758_v14  ;;  %v791_v44 = vpack.c.bf16 %v394_v43, %v393_v42  ;;  %v398_v49 = vld [vmem:[#allocation9 + $0x78] sm:$0xff]  ;;  %p992_p13 = scmp.lt.s32.totalorder %s990_s26, %s984_s24 }
  0x87   : > { %760 = vmatprep.subr.bf16.mxu0 %v1066_v3  ;;  %v797_v50 = vpack.c.bf16 %v398_v49, %v397_v48  ;;  %p987_p10 = pneg %p986_p2 }
  0x88   : > { %783 = vmatpush3.bf16.msra.mxu1 %v782_v24  ;;  %p993_p9 = por %p992_p13, %p991_p5 }
  0x89   : > { %784 = vmatprep.subr.bf16.mxu1 %v1066_v3 }
  0x8a   : > { %762 = vmatpush3.bf16.msra.mxu0 %v761_v21  ;;  %p994_p12 = pnand %p993_p9, %p987_p10 }
  0x8b   : > { %763 = vmatprep.subr.bf16.mxu0 %v1066_v3 }
  0x8c   : > { %786 = vmatpush3.bf16.msra.mxu1 %v785_v30 }
  0x8d   : > { %787 = vmatprep.subr.bf16.mxu1 %v1066_v3 }
  0x8e   : > { %765 = vmatpush3.bf16.msra.mxu0 %v764_v27 }
  0x8f   : > { %766 = vmatprep.subr.bf16.mxu0 %v1066_v3 }
  0x90   : > { %789 = vmatpush3.bf16.msra.mxu1 %v788_v36 }
  0x91   : > { %790 = vmatprep.subr.bf16.mxu1 %v1066_v3 }
  0x92   : > { %768 = vmatpush3.bf16.msra.mxu0 %v767_v33 }
  0x93   : > { %769 = vmatprep.subr.bf16.mxu0 %v1066_v3 }
  0x94   : > { %792 = vmatpush3.bf16.msra.mxu1 %v791_v44 }
  0x95   : > { %793 = vmatprep.subr.bf16.mxu1 %v1066_v3 }
  0x96   : > { %771 = vmatpush3.bf16.msra.mxu0 %v770_v37 }
  0x97   : > { %772 = vmatprep.subr.bf16.mxu0 %v1066_v3 }
  0x98   : > { %795 = vmatpush3.bf16.msra.mxu1 %v794_v47 }
  0x99   : > { %796 = vmatprep.subr.bf16.mxu1 %v1066_v3 }
  0x9a   : > { %774 = vmatpush3.bf16.msra.mxu0 %v773_v40 }
  0x9c   : > { %798 = vmatpush3.bf16.msra.mxu1 %v797_v50 }
  0x9d   : > { %714 = vmatmul.mubr.f32.vlgmr.msra.gmra.mrb[0].mxu0 %v294_v41 }
 0x170   : > { %v378_v52 = vpop.f32.mrb[0].mxu0 }
 0x171   : > { %v379_v53 = vadd.f32 %v378_v52, %v311_v51  ;;  %v715_v54 = vpop.f32.mrb[1].mxu0 }
 0x173   : > { %881 = vtanh.f32 %v379_v53 }
 0x17d   : > { %v882_v55 = vpop.eup %881 }
 0x17e   : > { %v471_v56 = vmul.f32 %v882_v55, %v882_v55  ;;  %749 = vmatmul.mubr.f32.vlgmr.msra.gmra.mrb[0].mxu1 %v882_v55 }
 0x180   : > { %v472_v58 = vsub.f32 1.0, %v471_v56 }
 0x182   : > { %v474_v59 = vmul.f32 %v473_v57, %v472_v58 }
 0x184   : > { %v475_v60 = vadd.f32 1.0, %v474_v59 }
 0x186   : > { %v476_v61 = vand.u32 2147483647, %v475_v60 }
 0x188   : > { %883 = vlog2.f32 %v476_v61 }
 0x192   : > { %v884_v62 = vpop.eup %883 }
 0x193   : > { %v478_v63 = vmul.f32 0.6931472, %v884_v62 }
 0x195   : > { %480 = vst.msk [vmem:[%s291_s30] sm:$0xff] %vm479_vm1, %v478_v63 }
 0x251   : > { %v465_v0 = vpop.f32.mrb[0].mxu1 }
 0x252   : > { %v469_v1 = vadd.f32 %v465_v0, %v294_v41  ;;  %v750_v2 = vpop.f32.mrb[1].mxu1 }
 0x254   : > { %470 = vst [vmem:[%s281_s27] sm:$0xff] %v469_v1 }
 0x255   : > { %997 = shalt.err (!%p994_p12)
}
 0x256   : > { %s998_s13 = scalar_lea.hbm %s1339_s14, 128  ;;  %s1002_s12 = scalar_lea.hbm %s1387_s4, 256 }
 0x257   : > { %p999_p3 = scmp.ne.s32.totalorder %s1339_s14, %s998_s13  ;;  %p1003_p8 = scmp.lt.u32.totalorder %s1339_s14, %s1387_s4 }
 0x258   : > { %p1004_p6 = scmp.lt.u32.totalorder %s1002_s12, %s998_s13  ;;  %p1006_p0 = scmp.lt.u32.totalorder %s998_s13, %s1339_s14 }
 0x259   : > { %p1000_p7 = pnand %p999_p3, %p1405_p1 }
 0x25a   : > { %p1005_p11 = por %p1004_p6, %p1003_p8 }
 0x25b   : > { %p1001_p4 = pneg %p1000_p7 }
 0x25c   : > { %p1007_p2 = por %p1006_p0, %p1005_p11 }
 0x25e   : > { %p1008_p10 = pnand %p1007_p2, %p1001_p4 }
 0x260   : > { %1011 = shalt.err (!%p1008_p10)
}
 0x261   : > { %813 = dma.vmem_to_hbm [thread:$0]  (%p1405_p1), %s1341_s16, 128, %s1339_s14, %s482_s7  }
 0x262 PF: > { %s514_s6 = sand.u32 1, %s1046_s18   ;;  %p1406_p5 = scmp.ne.s32.totalorder %s1393_s25, 0 }
 0x263   : > { %p1407_p13 = scmp.ge.s32.totalorder %s1058_s21, 2  ;;  %s515_s27 = scalar_lea.sflag [#allocation4], %s514_s6 }
 0x265   : > { %p830_p9 = pnand %p1407_p13, %p1406_p5 }
 0x267   : > { %1041 = dma.done.wait (!%p830_p9), %s515_s27, 128  }
 0x268   : > { %1043 = vsyncadd (!%p830_p9), %s515_s27, 4294967168  ;;  %p21_p12 = scmp.ge.s32.totalorder %s1232_s29, 4   ;;  %s1408_s18 = smov %s1050_s19 }
 0x269   : > { %s1409_s19 = smov %s1054_s20  ;;  %s1410_s20 = smov %s1242_s15 }
 0x26a   : > { %s1411_s21 = smov %s1232_s29  ;;  %23 = sbr.rel (!%p21_p12) target bundleno = 7 (0x7), region = 106 }
 0x271   :  { %527 = vsyncpa [#allocation3], 1 }
 0x272   :  { %529 = vsyncpa [#allocation3 + $0x1], 1 }
 0x273   :  { %530 = vsyncpa [#allocation8], 1 }
 0x274   :  { %531 = vsyncpa [#allocation4], 1 }
 0x275   :  { %533 = vsyncpa [#allocation4 + $0x1], 1 }
 0x276   :  { %534 = vsyncpa [#allocation5], 1 }
 0x277   :  { %536 = vsyncpa [#allocation5 + $0x1], 1 }

</bundles_post_ra>
